<compile_context>
chip_gen: v7x
topology: tpu7x:2x2x1
jax: 0.10.0
libtpu: 0.0.40
codegen_flags: <defaults>
</compile_context>

<pallas_src>
import jax
import jax.numpy as jnp
from jax.experimental import pallas as pl
from jax.experimental.pallas import tpu as pltpu

INPUT_DIM = 512
HIDDEN_DIM = 128
OUT_DIM = 5
MAX_TILE_M = 2048     # rows per grid step; ~10.3 MiB VMEM worst case (f32 x)
_MIN_SPLIT_B = 256    # above this, force >=2 grid steps (v7x dual-TensorCore)


def _round_up(n, m):
    return ((n + m - 1) // m) * m


def _pick_tile_m(batch):
    """Sublane-aligned batch tile; balanced across steps; >=2 steps for big B."""
    nsteps = pl.cdiv(batch, MAX_TILE_M)
    if batch >= _MIN_SPLIT_B:
        nsteps = max(nsteps, 2)          # let v7x shard the batch over both TCs
    return min(MAX_TILE_M, _round_up(pl.cdiv(batch, nsteps), 8))


def encoder_kernel(x_ref, w1_ref, b1_ref, w2_ref, b2_ref, o_ref):
    # fc1: (tm, 512) @ (512, 128) on the MXU, bf16 operands, f32 accumulation.
    xb = x_ref[...].astype(jnp.bfloat16)      # no-op if x already streams as bf16
    h = jnp.dot(xb, w1_ref[...], preferred_element_type=jnp.float32)
    h = jnp.tanh(h + b1_ref[...])             # bias add + tanh in f32 (VPU/EUP)
    # fc2: (tm, 128) @ (128, 5), bf16 operands, f32 accumulation.
    y = jnp.dot(h.astype(jnp.bfloat16), w2_ref[...],
                preferred_element_type=jnp.float32)
    o_ref[...] = (y + b2_ref[...]).astype(o_ref.dtype)


def encoder_forward(x, w1, b1, w2, b2):
    """x: (B, 512) f32 or bf16; w1: (512,128); b1: (1,128); w2: (128,5); b2: (1,5).

    Weights may be passed as f32 (cast here, ~0.4 MB, negligible) or bf16.
    Passing x as bf16 additionally halves the dominant HBM stream.
    """
    B = x.shape[0]

    w1 = w1.astype(jnp.bfloat16)
    w2 = w2.astype(jnp.bfloat16)
    b1 = b1.reshape(1, HIDDEN_DIM).astype(jnp.float32)
    b2 = b2.reshape(1, OUT_DIM).astype(jnp.float32)

    tile_m = _pick_tile_m(B)
    grid_m = pl.cdiv(B, tile_m)   # ragged last block: reads garbage rows, writes masked

    xbytes = jnp.dtype(x.dtype).itemsize
    cost = pl.CostEstimate(
        flops=2 * B * INPUT_DIM * HIDDEN_DIM + 2 * B * HIDDEN_DIM * OUT_DIM,
        transcendentals=B * HIDDEN_DIM,
        bytes_accessed=(
            B * INPUT_DIM * xbytes          # x
            + INPUT_DIM * HIDDEN_DIM * 2    # w1 (bf16)
            + HIDDEN_DIM * 4                # b1
            + HIDDEN_DIM * OUT_DIM * 2      # w2 (bf16)
            + OUT_DIM * 4                   # b2
            + B * OUT_DIM * 4               # out
        ),
    )

    return pl.pallas_call(
        encoder_kernel,
        out_shape=jax.ShapeDtypeStruct((B, OUT_DIM), jnp.float32),
        grid_spec=pltpu.PrefetchScalarGridSpec(
            num_scalar_prefetch=0,
            grid=(grid_m,),
            in_specs=[
                # x: tiled over batch (double-buffered -> DMA overlaps compute)
                pl.BlockSpec((tile_m, INPUT_DIM), lambda i: (i, 0)),
                # weights/biases: constant block index -> VMEM-resident
                pl.BlockSpec((INPUT_DIM, HIDDEN_DIM), lambda i: (0, 0)),
                pl.BlockSpec((1, HIDDEN_DIM), lambda i: (0, 0)),
                pl.BlockSpec((HIDDEN_DIM, OUT_DIM), lambda i: (0, 0)),
                pl.BlockSpec((1, OUT_DIM), lambda i: (0, 0)),
            ],
            out_specs=pl.BlockSpec((tile_m, OUT_DIM), lambda i: (i, 0)),
        ),
        compiler_params=pltpu.CompilerParams(
            dimension_semantics=("parallel",),
        ),
        cost_estimate=cost,
    )(x, w1, b1, w2, b2)


def init_params(key):
    # Deterministic init mimicking PyTorch Linear default (uniform +/- 1/sqrt(fan_in)).
    k1, k2, k3, k4 = jax.random.split(key, 4)
    lim1 = 1.0 / jnp.sqrt(INPUT_DIM)
    lim2 = 1.0 / jnp.sqrt(HIDDEN_DIM)
    w1 = jax.random.uniform(k1, (INPUT_DIM, HIDDEN_DIM), jnp.float32, -lim1, lim1)
    b1 = jax.random.uniform(k2, (1, HIDDEN_DIM), jnp.float32, -lim1, lim1)
    w2 = jax.random.uniform(k3, (HIDDEN_DIM, OUT_DIM), jnp.float32, -lim2, lim2)
    b2 = jax.random.uniform(k4, (1, OUT_DIM), jnp.float32, -lim2, lim2)
    return w1, b1, w2, b2


def _reference_f32(x, w1, b1, w2, b2):
    return jnp.tanh(x @ w1 + b1) @ w2 + b2


def _reference_bf16(x, w1, b1, w2, b2):
    # Mirrors the kernel's bf16-operand / f32-accumulation numerics.
    h = jnp.dot(x.astype(jnp.bfloat16), w1.astype(jnp.bfloat16),
                preferred_element_type=jnp.float32) + b1
    h = jnp.tanh(h)
    return jnp.dot(h.astype(jnp.bfloat16), w2.astype(jnp.bfloat16),
                   preferred_element_type=jnp.float32) + b2


if __name__ == "__main__":
    key = jax.random.PRNGKey(0)
    kx, kx2, kp = jax.random.split(key, 3)
    w1, b1, w2, b2 = init_params(kp)
    fwd = jax.jit(encoder_forward)

    # Case 1: small batch, single block.
    B = 8
    x = jax.random.normal(kx, (B, INPUT_DIM), jnp.float32)
    out = jax.block_until_ready(fwd(x, w1, b1, w2, b2))
    assert out.shape == (B, OUT_DIM)
    assert jnp.allclose(out, _reference_bf16(x, w1, b1, w2, b2),
                        atol=2e-3, rtol=2e-3)
    assert jnp.allclose(out, _reference_f32(x, w1, b1, w2, b2),
                        atol=5e-2, rtol=5e-2)

    # Case 2: non-aligned batch -> multi-block grid with masked ragged last block.
    B2 = 300
    x2 = jax.random.normal(kx2, (B2, INPUT_DIM), jnp.float32)
    out2 = jax.block_until_ready(fwd(x2, w1, b1, w2, b2))
    assert out2.shape == (B2, OUT_DIM)
    assert jnp.allclose(out2, _reference_bf16(x2, w1, b1, w2, b2),
                        atol=2e-3, rtol=2e-3)

    print("KERNEL_OK")
</pallas_src>

<mosaic_0001>
module attributes {stable_mosaic.version = 11 : i64} {
  func.func @encoder_kernel(%arg0: i32, %arg1: memref<8x512xf32, #tpu.memory_space<vmem>>, %arg2: memref<512x128xbf16, #tpu.memory_space<vmem>>, %arg3: memref<1x128xf32, #tpu.memory_space<vmem>>, %arg4: memref<128x5xbf16, #tpu.memory_space<vmem>>, %arg5: memref<1x5xf32, #tpu.memory_space<vmem>>, %arg6: memref<8x5xf32, #tpu.memory_space<vmem>>) attributes {dimension_semantics = [#tpu.dimension_semantics<parallel>], iteration_bounds = array<i64: 1>, scalar_prefetch = 0 : i64, scratch_operands = 0 : i64, tpu.core_type = #tpu.core_type<tc>, window_params = [{transform_indices = @transform_0, window_bounds = array<i64: 8, 512>}, {pipeline_mode = #tpu.pipeline_mode<synchronous>, transform_indices = @transform_1, window_bounds = array<i64: 512, 128>}, {pipeline_mode = #tpu.pipeline_mode<synchronous>, transform_indices = @transform_2, window_bounds = array<i64: 1, 128>}, {pipeline_mode = #tpu.pipeline_mode<synchronous>, transform_indices = @transform_3, window_bounds = array<i64: 128, 5>}, {pipeline_mode = #tpu.pipeline_mode<synchronous>, transform_indices = @transform_4, window_bounds = array<i64: 1, 5>}, {transform_indices = @transform_5, window_bounds = array<i64: 8, 5>}]} {
    %c0 = arith.constant 0 : index
    %c0_0 = arith.constant 0 : index
    %0 = vector.load %arg1[%c0, %c0_0] : memref<8x512xf32, #tpu.memory_space<vmem>>, vector<8x512xf32>
    %1 = arith.truncf %0 : vector<8x512xf32> to vector<8x512xbf16>
    %c0_1 = arith.constant 0 : index
    %c0_2 = arith.constant 0 : index
    %2 = vector.load %arg2[%c0_1, %c0_2] : memref<512x128xbf16, #tpu.memory_space<vmem>>, vector<512x128xbf16>
    %cst = arith.constant dense<0.000000e+00> : vector<8x128xf32>
    %3 = tpu.matmul %1, %2, %cst {dimension_numbers = #tpu.dot_dimension_numbers<[1], [0], [0], [1], [0, 0, 1, 1], [], []>} : vector<8x512xbf16>, vector<512x128xbf16>, vector<8x128xf32> -> vector<8x128xf32>
    %c0_3 = arith.constant 0 : index
    %c0_4 = arith.constant 0 : index
    %4 = vector.load %arg3[%c0_3, %c0_4] : memref<1x128xf32, #tpu.memory_space<vmem>>, vector<1x128xf32>
    %5 = vector.broadcast %4 : vector<1x128xf32> to vector<8x128xf32>
    %6 = arith.addf %3, %5 : vector<8x128xf32>
    %7 = math.tanh %6 : vector<8x128xf32>
    %8 = arith.truncf %7 : vector<8x128xf32> to vector<8x128xbf16>
    %c0_5 = arith.constant 0 : index
    %c0_6 = arith.constant 0 : index
    %9 = vector.load %arg4[%c0_5, %c0_6] : memref<128x5xbf16, #tpu.memory_space<vmem>>, vector<128x5xbf16>
    %cst_7 = arith.constant dense<0.000000e+00> : vector<8x5xf32>
    %10 = tpu.matmul %8, %9, %cst_7 {dimension_numbers = #tpu.dot_dimension_numbers<[1], [0], [0], [1], [0, 0, 1, 1], [], []>} : vector<8x128xbf16>, vector<128x5xbf16>, vector<8x5xf32> -> vector<8x5xf32>
    %c0_8 = arith.constant 0 : index
    %c0_9 = arith.constant 0 : index
    %11 = vector.load %arg5[%c0_8, %c0_9] : memref<1x5xf32, #tpu.memory_space<vmem>>, vector<1x5xf32>
    %12 = vector.broadcast %11 : vector<1x5xf32> to vector<8x5xf32>
    %13 = arith.addf %10, %12 : vector<8x5xf32>
    %c0_10 = arith.constant 0 : index
    %c0_11 = arith.constant 0 : index
    %14 = vector.load %arg6[%c0_10, %c0_11] : memref<8x5xf32, #tpu.memory_space<vmem>>, vector<8x5xf32>
    tpu.vector_store %arg6[%c0_10, %c0_11], %13 {strides = array<i32>} : memref<8x5xf32, #tpu.memory_space<vmem>>, vector<8x5xf32>,
    return
  }
  func.func @transform_0(%arg0: i32) -> (i32, i32) {
    %c0_i32 = arith.constant 0 : i32
    %c0_i32_0 = arith.constant 0 : i32
    return %arg0, %c0_i32 : i32, i32
  }
  func.func @transform_1(%arg0: i32) -> (i32, i32) {
    %c0_i32 = arith.constant 0 : i32
    %c0_i32_0 = arith.constant 0 : i32
    %c0_i32_1 = arith.constant 0 : i32
    return %c0_i32, %c0_i32_0 : i32, i32
  }
  func.func @transform_2(%arg0: i32) -> (i32, i32) {
    %c0_i32 = arith.constant 0 : i32
    %c0_i32_0 = arith.constant 0 : i32
    %c0_i32_1 = arith.constant 0 : i32
    return %c0_i32, %c0_i32_0 : i32, i32
  }
  func.func @transform_3(%arg0: i32) -> (i32, i32) {
    %c0_i32 = arith.constant 0 : i32
    %c0_i32_0 = arith.constant 0 : i32
    %c0_i32_1 = arith.constant 0 : i32
    return %c0_i32, %c0_i32_0 : i32, i32
  }
  func.func @transform_4(%arg0: i32) -> (i32, i32) {
    %c0_i32 = arith.constant 0 : i32
    %c0_i32_0 = arith.constant 0 : i32
    %c0_i32_1 = arith.constant 0 : i32
    return %c0_i32, %c0_i32_0 : i32, i32
  }
  func.func @transform_5(%arg0: i32) -> (i32, i32) {
    %c0_i32 = arith.constant 0 : i32
    %c0_i32_0 = arith.constant 0 : i32
    return %arg0, %c0_i32 : i32, i32
  }
}

</mosaic_0001>

<bundles_post_ra>
// kernel: encoder_forward.1
= control target key start
LH: loop header
LB: loop body
LE: loop exit
PB: predicated region body
PF: predicated region fallthrough
CT: control target
= control target key end

     0   :  { %v686_v39 = vmov 0.0   ;;  %s869_s0 = inlined_call_operand.vmem [shape: f32[8,512], index: 0, kind: input, shape index: {}]   ;;  %s870_s1 = inlined_call_operand.vmem [shape: bf16[512,128], index: 1, kind: input, shape index: {}]   ;;  %s871_s2 = inlined_call_operand.vmem [shape: f32[1,128], index: 2, kind: input, shape index: {}]   ;;  %s872_s3 = inlined_call_operand.vmem [shape: bf16[128,5], index: 3, kind: input, shape index: {}]   ;;  %s873_s4 = inlined_call_operand.vmem [shape: f32[1,5], index: 4, kind: input, shape index: {}]   ;;  %s874_s5 = inlined_call_operand.hbm [shape: f32[8,5], index: 5, kind: output, shape index: {}]  }
   0x1   :  { %v620_v0 = vld [vmem:[%s870_s1 + $0x40] sm:$0xff]   ;;  %v624_v4 = vld [vmem:[%s870_s1 + $0x48] sm:$0xff]   ;;  %v628_v8 = vld [vmem:[%s870_s1 + $0x50] sm:$0xff]  }
   0x2   :  { %v621_v1 = vld [vmem:[%s870_s1 + $0xc0] sm:$0xff]   ;;  %544 = vmatprep.subr.bf16.mxu0 %v620_v0  ;;  %v625_v5 = vld [vmem:[%s870_s1 + $0xc8] sm:$0xff]   ;;  %v629_v9 = vld [vmem:[%s870_s1 + $0xd0] sm:$0xff]  }
   0x3   :  { %v622_v2 = vld [vmem:[%s870_s1] sm:$0xff]   ;;  %566 = vmatprep.subr.bf16.mxu1 %v621_v1  ;;  %v626_v6 = vld [vmem:[%s870_s1 + $0x8] sm:$0xff]   ;;  %v630_v10 = vld [vmem:[%s870_s1 + $0x10] sm:$0xff]  }
   0x4   :  { %v623_v3 = vld [vmem:[%s870_s1 + $0x80] sm:$0xff]   ;;  %545 = vmatpush3.bf16.msra.mxu0 %v622_v2  ;;  %v627_v7 = vld [vmem:[%s870_s1 + $0x88] sm:$0xff]   ;;  %v631_v11 = vld [vmem:[%s870_s1 + $0x90] sm:$0xff]  }
   0x5   :  { %567 = vmatpush3.bf16.msra.mxu1 %v623_v3  ;;  %546 = vmatprep.subr.bf16.mxu0 %v624_v4  ;;  %v632_v12 = vld [vmem:[%s870_s1 + $0x58] sm:$0xff]   ;;  %v636_v16 = vld [vmem:[%s870_s1 + $0x60] sm:$0xff]   ;;  %v640_v20 = vld [vmem:[%s870_s1 + $0x68] sm:$0xff]  }
   0x6   :  { %568 = vmatprep.subr.bf16.mxu1 %v625_v5  ;;  %v633_v13 = vld [vmem:[%s870_s1 + $0xd8] sm:$0xff]   ;;  %v637_v17 = vld [vmem:[%s870_s1 + $0xe0] sm:$0xff]   ;;  %v641_v21 = vld [vmem:[%s870_s1 + $0xe8] sm:$0xff]  }
   0x7   :  { %v634_v14 = vld [vmem:[%s870_s1 + $0x18] sm:$0xff]   ;;  %v638_v18 = vld [vmem:[%s870_s1 + $0x20] sm:$0xff]   ;;  %v642_v22 = vld [vmem:[%s870_s1 + $0x28] sm:$0xff]  }
   0x8   :  { %547 = vmatpush3.bf16.msra.mxu0 %v626_v6  ;;  %v635_v15 = vld [vmem:[%s870_s1 + $0x98] sm:$0xff]   ;;  %v639_v19 = vld [vmem:[%s870_s1 + $0xa0] sm:$0xff]   ;;  %v643_v23 = vld [vmem:[%s870_s1 + $0xa8] sm:$0xff]  }
   0x9   :  { %569 = vmatpush3.bf16.msra.mxu1 %v627_v7  ;;  %548 = vmatprep.subr.bf16.mxu0 %v628_v8  ;;  %v644_v24 = vld [vmem:[%s870_s1 + $0x70] sm:$0xff]   ;;  %v648_v28 = vld [vmem:[%s870_s1 + $0x78] sm:$0xff]   ;;  %v23_v32 = vld [vmem:[%s869_s0 + $0x8] sm:$0xff] }
   0xa   :  { %570 = vmatprep.subr.bf16.mxu1 %v629_v9  ;;  %v645_v25 = vld [vmem:[%s870_s1 + $0xf0] sm:$0xff]   ;;  %v649_v29 = vld [vmem:[%s870_s1 + $0xf8] sm:$0xff]   ;;  %v22_v34 = vld [vmem:[%s869_s0] sm:$0xff]  ;;  %v27_v35 = vpack.c.bf16 %v23_v32, %v23_v32 }
   0xb   :  { %v646_v26 = vld [vmem:[%s870_s1 + $0x30] sm:$0xff]   ;;  %v650_v30 = vld [vmem:[%s870_s1 + $0x38] sm:$0xff]   ;;  %v26_v37 = vpack.c.bf16 %v22_v34, %v22_v34  ;;  %v652_v41 = vld [vmem:[%s872_s3] sm:$0xff]  }
   0xc   :  { %549 = vmatpush3.bf16.msra.mxu0 %v630_v10  ;;  %v647_v27 = vld [vmem:[%s870_s1 + $0xb0] sm:$0xff]   ;;  %v651_v31 = vld [vmem:[%s870_s1 + $0xb8] sm:$0xff]   ;;  %325 = vmatprep.mubr.bf16.mxu0 %v27_v35  ;;  %v653_v42 = vld [vmem:[%s872_s3 + $0x8] sm:$0xff]  }
   0xd   :  { %571 = vmatpush3.bf16.msra.mxu1 %v631_v11  ;;  %550 = vmatprep.subr.bf16.mxu0 %v632_v12  ;;  %v25_v33 = vld [vmem:[%s869_s0 + $0x18] sm:$0xff]  ;;  %v24_v38 = vld [vmem:[%s869_s0 + $0x10] sm:$0xff] }
   0xe   :  { %572 = vmatprep.subr.bf16.mxu1 %v633_v13  ;;  %v29_v36 = vpack.c.bf16 %v25_v33, %v25_v33  ;;  %v28_v40 = vpack.c.bf16 %v24_v38, %v24_v38 }
  0x10   :  { %551 = vmatpush3.bf16.msra.mxu0 %v634_v14  ;;  %365 = vmatprep.mubr.bf16.mxu1 %v29_v36 }
  0x11   :  { %573 = vmatpush3.bf16.msra.mxu1 %v635_v15  ;;  %552 = vmatprep.subr.bf16.mxu0 %v636_v16 }
  0x12   :  { %574 = vmatprep.subr.bf16.mxu1 %v637_v17 }
  0x14   :  { %553 = vmatpush3.bf16.msra.mxu0 %v638_v18 }
  0x15   :  { %575 = vmatpush3.bf16.msra.mxu1 %v639_v19  ;;  %554 = vmatprep.subr.bf16.mxu0 %v640_v20 }
  0x16   :  { %576 = vmatprep.subr.bf16.mxu1 %v641_v21 }
  0x18   :  { %555 = vmatpush3.bf16.msra.mxu0 %v642_v22 }
  0x19   :  { %577 = vmatpush3.bf16.msra.mxu1 %v643_v23  ;;  %556 = vmatprep.subr.bf16.mxu0 %v644_v24 }
  0x1a   :  { %578 = vmatprep.subr.bf16.mxu1 %v645_v25 }
  0x1c   :  { %557 = vmatpush3.bf16.msra.mxu0 %v646_v26 }
  0x1d   :  { %579 = vmatpush3.bf16.msra.mxu1 %v647_v27  ;;  %558 = vmatprep.subr.bf16.mxu0 %v648_v28 }
  0x1e   :  { %580 = vmatprep.subr.bf16.mxu1 %v649_v29 }
  0x20   :  { %559 = vmatpush3.bf16.msra.mxu0 %v650_v30 }
  0x21   :  { %581 = vmatpush3.bf16.msra.mxu1 %v651_v31  ;;  %597 = vmatprep.subr.bf16.mxu0 %v686_v39 }
  0x23   :  { %326 = vmatmul.mubr.bf16.vlgmr.msra.gmra.mrb[0].mxu0 %v26_v37 }
  0x24   :  { %366 = vmatmul.mubr.bf16.vlgmr.msra.gmra.mrb[0].mxu1 %v28_v40  ;;  %598 = vmatpush3.bf16.msra.mxu0 %v652_v41 }
  0x25   :  { %599 = vmatprep.subr.bf16.mxu0 %v686_v39 }
  0x26   :  { %10 = vsyncpa [#allocation3], 0  ;;  %v654_v43 = vld [vmem:[%s872_s3 + $0x10] sm:$0xff]   ;;  %v655_v44 = vld [vmem:[%s872_s3 + $0x18] sm:$0xff]   ;;  %vm687_vm0 = vmmov 0   ;;  %s688_s7 = smov [#allocation2]  }
  0x27   :  { %v656_v45 = vld [vmem:[%s872_s3 + $0x20] sm:$0xff]   ;;  %v657_v46 = vld [vmem:[%s872_s3 + $0x28] sm:$0xff]   ;;  %v658_v47 = vld [vmem:[%s872_s3 + $0x30] sm:$0xff]   ;;  %613 = vmatprep.mubr.msk.bf16.mxu0 %vm687_vm0, %v686_v39  ;;  %vm486_vm1 = vcmask 39936  }
  0x28   :  { %600 = vmatpush3.bf16.msra.mxu0 %v653_v42  ;;  %v659_v48 = vld [vmem:[%s872_s3 + $0x38] sm:$0xff]   ;;  %v502_v51 = vld [vmem:[%s871_s2] ss:$0 sm:$0xff]  ;;  %s494_s2 = sshll.u32 %s688_s7, 4  ;;  %s495_s2 = int_to_ptr.vmem [resolvable:$true] %s494_s2 }
  0x29   :  { %601 = vmatprep.subr.bf16.mxu0 %v686_v39  ;;  %v535_v0 = vld [vmem:[%s873_s4] ss:$0 sm:$0xff]  ;;  %s662_s8 = scalar_lea.vmem %s495_s2, 128  ;;  %p667_p1 = scmp.lt.s32.totalorder %s495_s2, %s495_s2 }
  0x2a   :  { %p663_p0 = scmp.ne.s32.totalorder %s495_s2, %s662_s8  ;;  %p668_p2 = scmp.lt.s32.totalorder %s662_s8, %s662_s8 }
  0x2c   :  { %602 = vmatpush3.bf16.msra.mxu0 %v654_v43  ;;  %p669_p3 = por %p668_p2, %p667_p1 }
  0x2d   :  { %603 = vmatprep.subr.bf16.mxu0 %v686_v39 }
  0x2e   :  { %p670_p4 = pnand %p669_p3, %p663_p0 }
  0x30   :  { %604 = vmatpush3.bf16.msra.mxu0 %v655_v44 }
  0x31   :  { %605 = vmatprep.subr.bf16.mxu0 %v686_v39 }
  0x34   :  { %606 = vmatpush3.bf16.msra.mxu0 %v656_v45 }
  0x35   :  { %607 = vmatprep.subr.bf16.mxu0 %v686_v39 }
  0x38   :  { %608 = vmatpush3.bf16.msra.mxu0 %v657_v46 }
  0x39   :  { %609 = vmatprep.subr.bf16.mxu0 %v686_v39 }
  0x3c   :  { %610 = vmatpush3.bf16.msra.mxu0 %v658_v47 }
  0x3d   :  { %611 = vmatprep.subr.bf16.mxu0 %v686_v39 }
  0x40   :  { %612 = vmatpush3.bf16.msra.mxu0 %v659_v48 }
  0xf6   :  { %v560_v49 = vpop.f32.mrb[0].mxu0 }
  0xf7   :  { %v582_v50 = vpop.f32.mrb[0].mxu1  ;;  %v561_v52 = vpop.f32.mrb[1].mxu0 }
  0xf8   :  { %v583_v53 = vpop.f32.mrb[1].mxu1  ;;  %v562_v54 = vadd.f32 %v561_v52, %v560_v49  ;;  %v563_v56 = vpop.f32.mrb[2].mxu0 }
  0xf9   :  { %v584_v55 = vadd.f32 %v583_v53, %v582_v50  ;;  %v585_v57 = vpop.f32.mrb[2].mxu1  ;;  %v564_v58 = vpop.f32.mrb[3].mxu0 }
  0xfa   :  { %v586_v59 = vpop.f32.mrb[3].mxu1  ;;  %v328_v60 = vadd.f32 %v562_v54, %v502_v51 }
  0xfc   :  { %v368_v61 = vadd.f32 %v584_v55, %v328_v60 }
  0xfe   :  { %660 = vtanh.f32 %v368_v61 }
 0x108   :  { %v661_v62 = vpop.eup %660 }
 0x109   :  { %v374_v63 = vpack.c.bf16 %v661_v62, %v661_v62 }
 0x10b   :  { %614 = vmatmul.mubr.bf16.vlgmr.msra.gmra.mrb[4].mxu0 %v374_v63 }
 0x1de   :  { %v480_v1 = vpop.f32.mrb[4].mxu0 }
 0x1df   :  { %v481_v2 = vadd.f32 %v535_v0, %v480_v1  ;;  %v615_v3 = vpop.f32.mrb[5].mxu0 }
 0x1e0   :  { %v483_v4 = vpop.f32.mrb[6].mxu0 }
 0x1e1   :  { %v616_v5 = vpop.f32.mrb[7].mxu0  ;;  %487 = vst.msk [vmem:[#allocation2] sm:$0xff] %vm486_vm1, %v481_v2 }
 0x1e2   :  { %673 = shalt.err (!%p670_p4)
}
 0x1e3   :  { %s674_s4 = scalar_lea.hbm %s874_s5, 128 }
 0x1e4   :  { %p675_p5 = scmp.ne.s32.totalorder %s874_s5, %s674_s4  ;;  %p678_p6 = scmp.lt.u32.totalorder %s674_s4, %s874_s5 }
 0x1e6   :  { %p680_p7 = pnand %p678_p6, %p675_p5 }
 0x1e8   :  { %683 = shalt.err (!%p680_p7)
}
 0x1e9   :  { %497 = dma.vmem_to_hbm [thread:$0]  %s495_s2, 128, %s874_s5, [#allocation3]  }
 0x1ea   :  { %684 = dma.done.wait [#allocation3], 128  }
 0x1eb   :  { %685 = vsyncadd [#allocation3], 4294967168 }
 0x1ec   :  { %501 = vsyncpa [#allocation3], 1 }

</bundles_post_ra>
